<compile_context>
chip_gen: v7x
topology: tpu7x:2x2x1
jax: 0.10.0
libtpu: 0.0.40
codegen_flags: <defaults>
</compile_context>

<pallas_src>
import functools

import jax
import jax.numpy as jnp
from jax.experimental import pallas as pl
from jax.experimental.pallas import tpu as pltpu

# ----------------------------- tiny BERT config ------------------------------
VOCAB = 64
HIDDEN = 32
LAYERS = 2
HEADS = 2
HEAD_DIM = HIDDEN // HEADS
INTERMEDIATE = 64
MAX_POS = 16
TYPE_VOCAB = 2
NUM_LABELS = 3
EPS = 1e-12


# ------------------------------ in-kernel helpers -----------------------------
def _ln(x, g, b, eps=EPS):
    mu = jnp.mean(x, axis=-1, keepdims=True)
    xc = x - mu
    var = jnp.mean(xc * xc, axis=-1, keepdims=True)
    return xc * jax.lax.rsqrt(var + eps) * g + b


def _gelu(x):
    # TODO(synk): HF BERT default is exact (erf) GELU; tanh approximation used
    # here because it is guaranteed to lower cleanly in Mosaic.
    return 0.5 * x * (1.0 + jnp.tanh(0.7978845608028654 * (x + 0.044715 * x * x * x)))


# ------------------------------ fused BERT kernel ------------------------------
def _bert_kernel(x_ref, mask_ref, embg_ref, embb_ref,
                 wqkv_ref, bqkv_ref, wo_ref, bo_ref,
                 ln1_g_ref, ln1_b_ref, w1_ref, b1_ref, w2_ref, b2_ref,
                 ln2_g_ref, ln2_b_ref, wp_ref, bp_ref,
                 pooled_ref, acc_ref, *, batch, seq, heads, head_dim):
    layer = pl.program_id(0)
    hidden = heads * head_dim

    # Layer 0: seed the VMEM-resident carry with the LayerNorm'd embeddings
    # (embedding LN fused here -> no extra pallas_call / HBM round trip).
    @pl.when(layer == 0)
    def _():
        acc_ref[...] = _ln(x_ref[...], embg_ref[...], embb_ref[...])

    x = acc_ref[...]                     # (B*S, HIDDEN), VMEM-resident across layers
    mask = mask_ref[...]                 # (B, S) additive key-axis mask

    # ---- self-attention: fused QKV projection (one MXU pass instead of three) ----
    qkv = jnp.dot(x, wqkv_ref[0], preferred_element_type=jnp.float32) + bqkv_ref[0]
    scale = 1.0 / (head_dim ** 0.5)
    q = qkv[:, 0 * hidden:1 * hidden] * scale        # fold 1/sqrt(d) into Q once
    k = qkv[:, 1 * hidden:2 * hidden]
    v = qkv[:, 2 * hidden:3 * hidden]

    ctx_rows = []
    for b in range(batch):               # static unroll: all B*H head blocks stay in VMEM
        rows = slice(b * seq, (b + 1) * seq)
        mb = mask[b:b + 1, :]            # (1, S), broadcast over query rows
        head_ctx = []
        for h in range(heads):
            cols = slice(h * head_dim, (h + 1) * head_dim)
            qh, kh, vh = q[rows, cols], k[rows, cols], v[rows, cols]
            s = jax.lax.dot_general(qh, kh, (((1,), (1,)), ((), ())),
                                    preferred_element_type=jnp.float32)
            s = s + mb
            s = s - jnp.max(s, axis=-1, keepdims=True)
            p = jnp.exp(s)
            p = p * pl.reciprocal(jnp.sum(p, axis=-1, keepdims=True), approx=True)
            head_ctx.append(jnp.dot(p, vh, preferred_element_type=jnp.float32))
        ctx_rows.append(jnp.concatenate(head_ctx, axis=-1))
    ctx = jnp.concatenate(ctx_rows, axis=0)          # (B*S, HIDDEN)

    attn_out = jnp.dot(ctx, wo_ref[0], preferred_element_type=jnp.float32) + bo_ref[0]
    x = _ln(attn_out + x, ln1_g_ref[0], ln1_b_ref[0])

    # ---- feed-forward ----
    h1 = _gelu(jnp.dot(x, w1_ref[0], preferred_element_type=jnp.float32) + b1_ref[0])
    ffn = jnp.dot(h1, w2_ref[0], preferred_element_type=jnp.float32) + b2_ref[0]
    x = _ln(ffn + x, ln2_g_ref[0], ln2_b_ref[0])

    acc_ref[...] = x                     # carry to next layer (stays in VMEM)

    # Last layer: fused pooler tanh(CLS @ Wp + bp).  Only (B, HIDDEN) goes to HBM;
    # the full sequence output never leaves VMEM.
    @pl.when(layer == pl.num_programs(0) - 1)
    def _():
        cls = jnp.concatenate([x[b * seq:b * seq + 1, :] for b in range(batch)], axis=0)
        pooled = jnp.tanh(
            jnp.dot(cls, wp_ref[...], preferred_element_type=jnp.float32) + bp_ref[...])
        pooled_ref[...] = pooled.astype(pooled_ref.dtype)


def bert_encode_pool(emb, add_mask, params, batch, seq):
    """Embedding LN + all encoder layers + pooler in ONE pallas_call."""
    M, H = emb.shape
    lp = params["encoder"]

    def resident(shape):                 # same block for every layer step
        return pl.BlockSpec(shape, lambda l: (0,) * len(shape))

    def per_layer(arr):                  # stacked weights: pick layer l's slice
        nd = arr.ndim
        return pl.BlockSpec((1,) + arr.shape[1:], lambda l: (l,) + (0,) * (nd - 1))

    emb_g = params["emb_ln_g"].reshape(1, H)
    emb_b = params["emb_ln_b"].reshape(1, H)
    wp = params["wp"]
    bp = params["bp"].reshape(1, H)

    layer_ws = [lp["wqkv"], lp["bqkv"], lp["wo"], lp["bo"],
                lp["ln1_g"], lp["ln1_b"], lp["w1"], lp["b1"],
                lp["w2"], lp["b2"], lp["ln2_g"], lp["ln2_b"]]

    return pl.pallas_call(
        functools.partial(_bert_kernel, batch=batch, seq=seq,
                          heads=HEADS, head_dim=HEAD_DIM),
        grid=(LAYERS,),
        in_specs=([resident((M, H)), resident(add_mask.shape),
                   resident(emb_g.shape), resident(emb_b.shape)]
                  + [per_layer(w) for w in layer_ws]
                  + [resident(wp.shape), resident(bp.shape)]),
        out_specs=resident((batch, H)),
        out_shape=jax.ShapeDtypeStruct((batch, H), jnp.float32),
        scratch_shapes=[pltpu.VMEM((M, H), jnp.float32)],
        compiler_params=pltpu.CompilerParams(dimension_semantics=("arbitrary",)),
    )(emb, add_mask, emb_g, emb_b, *layer_ws, wp, bp)


# ------------------------------ parameter setup -------------------------------
def init_params(key):
    def normal(k, shape, std=0.02):
        return (std * jax.random.normal(k, shape)).astype(jnp.float32)

    keys = iter(jax.random.split(key, 5 + LAYERS * 6))
    params = {
        "word_emb": normal(next(keys), (VOCAB, HIDDEN)),
        "pos_emb": normal(next(keys), (MAX_POS, HIDDEN)),
        "type_emb": normal(next(keys), (TYPE_VOCAB, HIDDEN)),
        "emb_ln_g": jnp.ones((HIDDEN,), jnp.float32),
        "emb_ln_b": jnp.zeros((HIDDEN,), jnp.float32),
        "wp": normal(next(keys), (HIDDEN, HIDDEN)),
        "bp": jnp.zeros((HIDDEN,), jnp.float32),
        "wc": normal(next(keys), (HIDDEN, NUM_LABELS)),
        "bc": jnp.zeros((NUM_LABELS,), jnp.float32),
    }
    wqkv, wo, w1, w2 = [], [], [], []
    for _ in range(LAYERS):
        wq = normal(next(keys), (HIDDEN, HIDDEN))
        wk = normal(next(keys), (HIDDEN, HIDDEN))
        wv = normal(next(keys), (HIDDEN, HIDDEN))
        wqkv.append(jnp.concatenate([wq, wk, wv], axis=1))   # fused QKV weight
        wo.append(normal(next(keys), (HIDDEN, HIDDEN)))
        w1.append(normal(next(keys), (HIDDEN, INTERMEDIATE)))
        w2.append(normal(next(keys), (INTERMEDIATE, HIDDEN)))
    params["encoder"] = {
        "wqkv": jnp.stack(wqkv),                                   # (L, H, 3H)
        "bqkv": jnp.zeros((LAYERS, 1, 3 * HIDDEN), jnp.float32),
        "wo": jnp.stack(wo),                                       # (L, H, H)
        "bo": jnp.zeros((LAYERS, 1, HIDDEN), jnp.float32),
        "ln1_g": jnp.ones((LAYERS, 1, HIDDEN), jnp.float32),
        "ln1_b": jnp.zeros((LAYERS, 1, HIDDEN), jnp.float32),
        "w1": jnp.stack(w1),                                       # (L, H, I)
        "b1": jnp.zeros((LAYERS, 1, INTERMEDIATE), jnp.float32),
        "w2": jnp.stack(w2),                                       # (L, I, H)
        "b2": jnp.zeros((LAYERS, 1, HIDDEN), jnp.float32),
        "ln2_g": jnp.ones((LAYERS, 1, HIDDEN), jnp.float32),
        "ln2_b": jnp.zeros((LAYERS, 1, HIDDEN), jnp.float32),
    }
    return params


# ------------------------------- forward pass ---------------------------------
def bert_classifier_forward(params, input_ids, attention_mask, token_type_ids):
    B, S = input_ids.shape

    # Embeddings (gathers are glue). Dropout: eval mode (no-op).
    pos_ids = jnp.arange(S)
    emb = (params["word_emb"][input_ids]
           + params["pos_emb"][pos_ids][None, :, :]
           + params["type_emb"][token_type_ids])
    emb = emb.reshape(B * S, HIDDEN).astype(jnp.float32)

    # Extended additive attention mask over the key axis: (1 - mask) * -10000.
    add_mask = ((1.0 - attention_mask.astype(jnp.float32)) * -10000.0).reshape(B, S)

    # Embedding LN + encoder + pooler, fully fused in one pallas_call.
    pooled = bert_encode_pool(emb, add_mask, params, B, S)

    # Classifier + softmax(dim=1): output width NUM_LABELS=3 is far below a
    # 128-lane tile, so Pallas stores would be almost entirely masked; XLA fuses
    # this tail for free.
    logits = pooled @ params["wc"] + params["bc"]
    return jax.nn.softmax(logits, axis=1)


# ----------------------------------- main --------------------------------------
if __name__ == "__main__":
    B, S = 2, 8
    root = jax.random.PRNGKey(0)
    kparam, kids = jax.random.split(root)
    params = init_params(kparam)

    input_ids = jax.random.randint(kids, (B, S), 0, VOCAB, dtype=jnp.int32)
    attention_mask = jnp.ones((B, S), dtype=jnp.int32).at[1, 6:].set(0)
    token_type_ids = jnp.zeros((B, S), dtype=jnp.int32).at[:, 4:].set(1)

    fwd = jax.jit(functools.partial(bert_classifier_forward, params))
    probs = fwd(input_ids, attention_mask, token_type_ids)
    jax.block_until_ready(probs)

    assert probs.shape == (B, NUM_LABELS)
    assert bool(jnp.all(jnp.isfinite(probs)))
    assert bool(jnp.allclose(jnp.sum(probs, axis=1), 1.0, atol=1e-5))
    print("KERNEL_OK")
</pallas_src>

<mosaic_0001>
module attributes {stable_mosaic.version = 11 : i64} {
  func.func @_bert_kernel(%arg0: i32, %arg1: memref<16x32xf32, #tpu.memory_space<vmem>>, %arg2: memref<2x8xf32, #tpu.memory_space<vmem>>, %arg3: memref<1x32xf32, #tpu.memory_space<vmem>>, %arg4: memref<1x32xf32, #tpu.memory_space<vmem>>, %arg5: memref<1x32x96xf32, #tpu.memory_space<vmem>>, %arg6: memref<1x1x96xf32, #tpu.memory_space<vmem>>, %arg7: memref<1x32x32xf32, #tpu.memory_space<vmem>>, %arg8: memref<1x1x32xf32, #tpu.memory_space<vmem>>, %arg9: memref<1x1x32xf32, #tpu.memory_space<vmem>>, %arg10: memref<1x1x32xf32, #tpu.memory_space<vmem>>, %arg11: memref<1x32x64xf32, #tpu.memory_space<vmem>>, %arg12: memref<1x1x64xf32, #tpu.memory_space<vmem>>, %arg13: memref<1x64x32xf32, #tpu.memory_space<vmem>>, %arg14: memref<1x1x32xf32, #tpu.memory_space<vmem>>, %arg15: memref<1x1x32xf32, #tpu.memory_space<vmem>>, %arg16: memref<1x1x32xf32, #tpu.memory_space<vmem>>, %arg17: memref<32x32xf32, #tpu.memory_space<vmem>>, %arg18: memref<1x32xf32, #tpu.memory_space<vmem>>, %arg19: memref<2x32xf32, #tpu.memory_space<vmem>>, %arg20: memref<16x32xf32, #tpu.memory_space<vmem>>) attributes {dimension_semantics = [#tpu.dimension_semantics<arbitrary>], iteration_bounds = array<i64: 2>, scalar_prefetch = 0 : i64, scratch_operands = 1 : i64, tpu.core_type = #tpu.core_type<tc>, window_params = [{pipeline_mode = #tpu.pipeline_mode<synchronous>, transform_indices = @transform_0, window_bounds = array<i64: 16, 32>}, {pipeline_mode = #tpu.pipeline_mode<synchronous>, transform_indices = @transform_1, window_bounds = array<i64: 2, 8>}, {pipeline_mode = #tpu.pipeline_mode<synchronous>, transform_indices = @transform_2, window_bounds = array<i64: 1, 32>}, {pipeline_mode = #tpu.pipeline_mode<synchronous>, transform_indices = @transform_3, window_bounds = array<i64: 1, 32>}, {transform_indices = @transform_4, window_bounds = array<i64: 1, 32, 96>}, {transform_indices = @transform_5, window_bounds = array<i64: 1, 1, 96>}, {transform_indices = @transform_6, window_bounds = array<i64: 1, 32, 32>}, {transform_indices = @transform_7, window_bounds = array<i64: 1, 1, 32>}, {transform_indices = @transform_8, window_bounds = array<i64: 1, 1, 32>}, {transform_indices = @transform_9, window_bounds = array<i64: 1, 1, 32>}, {transform_indices = @transform_10, window_bounds = array<i64: 1, 32, 64>}, {transform_indices = @transform_11, window_bounds = array<i64: 1, 1, 64>}, {transform_indices = @transform_12, window_bounds = array<i64: 1, 64, 32>}, {transform_indices = @transform_13, window_bounds = array<i64: 1, 1, 32>}, {transform_indices = @transform_14, window_bounds = array<i64: 1, 1, 32>}, {transform_indices = @transform_15, window_bounds = array<i64: 1, 1, 32>}, {pipeline_mode = #tpu.pipeline_mode<synchronous>, transform_indices = @transform_16, window_bounds = array<i64: 32, 32>}, {pipeline_mode = #tpu.pipeline_mode<synchronous>, transform_indices = @transform_17, window_bounds = array<i64: 1, 32>}, {pipeline_mode = #tpu.pipeline_mode<synchronous>, transform_indices = @transform_18, window_bounds = array<i64: 2, 32>}]} {
    %c0_i32 = arith.constant 0 : i32
    %0 = arith.cmpi eq, %arg0, %c0_i32 : i32
    %1 = arith.extui %0 : i1 to i32
    %c0_i32_0 = arith.constant 0 : i32
    %2 = arith.cmpi ne, %1, %c0_i32_0 : i32
    scf.if %2 {
      %c0_77 = arith.constant 0 : index
      %c0_78 = arith.constant 0 : index
      %178 = vector.load %arg1[%c0_77, %c0_78] : memref<16x32xf32, #tpu.memory_space<vmem>>, vector<16x32xf32>
      %c0_79 = arith.constant 0 : index
      %c0_80 = arith.constant 0 : index
      %179 = vector.load %arg3[%c0_79, %c0_80] : memref<1x32xf32, #tpu.memory_space<vmem>>, vector<1x32xf32>
      %c0_81 = arith.constant 0 : index
      %c0_82 = arith.constant 0 : index
      %180 = vector.load %arg4[%c0_81, %c0_82] : memref<1x32xf32, #tpu.memory_space<vmem>>, vector<1x32xf32>
      %cst_83 = arith.constant dense<0.000000e+00> : vector<16xf32>
      %181 = vector.multi_reduction <add>, %178, %cst_83 [1] : vector<16x32xf32> to vector<16xf32>
      %182 = vector.shape_cast %181 : vector<16xf32> to vector<16x1xf32>
      %cst_84 = arith.constant 3.200000e+01 : f32
      %183 = vector.broadcast %cst_84 : f32 to vector<16x1xf32>
      %184 = arith.divf %182, %183 : vector<16x1xf32>
      %185 = vector.broadcast %184 : vector<16x1xf32> to vector<16x32xf32>
      %186 = arith.subf %178, %185 : vector<16x32xf32>
      %187 = arith.mulf %186, %186 : vector<16x32xf32>
      %cst_85 = arith.constant dense<0.000000e+00> : vector<16xf32>
      %188 = vector.multi_reduction <add>, %187, %cst_85 [1] : vector<16x32xf32> to vector<16xf32>
      %189 = vector.shape_cast %188 : vector<16xf32> to vector<16x1xf32>
      %cst_86 = arith.constant 3.200000e+01 : f32
      %190 = vector.broadcast %cst_86 : f32 to vector<16x1xf32>
      %191 = arith.divf %189, %190 : vector<16x1xf32>
      %cst_87 = arith.constant 9.99999996E-13 : f32
      %192 = vector.broadcast %cst_87 : f32 to vector<16x1xf32>
      %193 = arith.addf %191, %192 : vector<16x1xf32>
      %194 = math.rsqrt %193 : vector<16x1xf32>
      %195 = vector.broadcast %194 : vector<16x1xf32> to vector<16x32xf32>
      %196 = arith.mulf %186, %195 : vector<16x32xf32>
      %197 = vector.broadcast %179 : vector<1x32xf32> to vector<16x32xf32>
      %198 = arith.mulf %196, %197 : vector<16x32xf32>
      %199 = vector.broadcast %180 : vector<1x32xf32> to vector<16x32xf32>
      %200 = arith.addf %198, %199 : vector<16x32xf32>
      %c0_88 = arith.constant 0 : index
      %c0_89 = arith.constant 0 : index
      %201 = vector.load %arg20[%c0_88, %c0_89] : memref<16x32xf32, #tpu.memory_space<vmem>>, vector<16x32xf32>
      tpu.vector_store %arg20[%c0_88, %c0_89], %200 {strides = array<i32>} : memref<16x32xf32, #tpu.memory_space<vmem>>, vector<16x32xf32>,
    } else {
    }
    %c0 = arith.constant 0 : index
    %c0_1 = arith.constant 0 : index
    %3 = vector.load %arg20[%c0, %c0_1] : memref<16x32xf32, #tpu.memory_space<vmem>>, vector<16x32xf32>
    %c0_2 = arith.constant 0 : index
    %c0_3 = arith.constant 0 : index
    %4 = vector.load %arg2[%c0_2, %c0_3] : memref<2x8xf32, #tpu.memory_space<vmem>>, vector<2x8xf32>
    %c0_4 = arith.constant 0 : index
    %c0_5 = arith.constant 0 : index
    %c0_6 = arith.constant 0 : index
    %5 = vector.load %arg5[%c0_4, %c0_5, %c0_6] : memref<1x32x96xf32, #tpu.memory_space<vmem>>, vector<1x32x96xf32>
    %6 = vector.shape_cast %5 : vector<1x32x96xf32> to vector<32x96xf32>
    %cst = arith.constant dense<0.000000e+00> : vector<16x96xf32>
    %7 = tpu.matmul %3, %6, %cst {dimension_numbers = #tpu.dot_dimension_numbers<[1], [0], [0], [1], [0, 0, 1, 1], [], []>} : vector<16x32xf32>, vector<32x96xf32>, vector<16x96xf32> -> vector<16x96xf32>
    %c0_7 = arith.constant 0 : index
    %c0_8 = arith.constant 0 : index
    %c0_9 = arith.constant 0 : index
    %8 = vector.load %arg6[%c0_7, %c0_8, %c0_9] : memref<1x1x96xf32, #tpu.memory_space<vmem>>, vector<1x1x96xf32>
    %9 = vector.shape_cast %8 : vector<1x1x96xf32> to vector<1x96xf32>
    %10 = vector.broadcast %9 : vector<1x96xf32> to vector<16x96xf32>
    %11 = arith.addf %7, %10 : vector<16x96xf32>
    %12 = vector.extract_strided_slice %11 {offsets = [0, 0], sizes = [16, 32], strides = [1, 1]} : vector<16x96xf32> to vector<16x32xf32>
    %cst_10 = arith.constant 2.500000e-01 : f32
    %13 = vector.broadcast %cst_10 : f32 to vector<16x32xf32>
    %14 = arith.mulf %12, %13 : vector<16x32xf32>
    %15 = vector.extract_strided_slice %11 {offsets = [0, 32], sizes = [16, 32], strides = [1, 1]} : vector<16x96xf32> to vector<16x32xf32>
    %16 = vector.extract_strided_slice %11 {offsets = [0, 64], sizes = [16, 32], strides = [1, 1]} : vector<16x96xf32> to vector<16x32xf32>
    %17 = vector.extract_strided_slice %4 {offsets = [0, 0], sizes = [1, 8], strides = [1, 1]} : vector<2x8xf32> to vector<1x8xf32>
    %18 = vector.extract_strided_slice %14 {offsets = [0, 0], sizes = [8, 16], strides = [1, 1]} : vector<16x32xf32> to vector<8x16xf32>
    %19 = vector.extract_strided_slice %15 {offsets = [0, 0], sizes = [8, 16], strides = [1, 1]} : vector<16x32xf32> to vector<8x16xf32>
    %20 = vector.extract_strided_slice %16 {offsets = [0, 0], sizes = [8, 16], strides = [1, 1]} : vector<16x32xf32> to vector<8x16xf32>
    %cst_11 = arith.constant dense<0.000000e+00> : vector<8x8xf32>
    %21 = tpu.matmul %18, %19, %cst_11 {dimension_numbers = #tpu.dot_dimension_numbers<[1], [1], [0], [0], [0, 0, 1, 0], [], []>} : vector<8x16xf32>, vector<8x16xf32>, vector<8x8xf32> -> vector<8x8xf32>
    %22 = vector.broadcast %17 : vector<1x8xf32> to vector<8x8xf32>
    %23 = arith.addf %21, %22 : vector<8x8xf32>
    %cst_12 = arith.constant dense<0xFF800000> : vector<8xf32>
    %24 = vector.multi_reduction <maximumf>, %23, %cst_12 [1] : vector<8x8xf32> to vector<8xf32>
    %25 = vector.shape_cast %24 : vector<8xf32> to vector<8x1xf32>
    %26 = vector.broadcast %25 : vector<8x1xf32> to vector<8x8xf32>
    %27 = arith.subf %23, %26 : vector<8x8xf32>
    %28 = math.exp %27 : vector<8x8xf32>
    %cst_13 = arith.constant dense<0.000000e+00> : vector<8xf32>
    %29 = vector.multi_reduction <add>, %28, %cst_13 [1] : vector<8x8xf32> to vector<8xf32>
    %30 = vector.shape_cast %29 : vector<8xf32> to vector<8x1xf32>
    %31 = tpu.reciprocal %30 {approx = true} : vector<8x1xf32> -> vector<8x1xf32>
    %32 = vector.broadcast %31 : vector<8x1xf32> to vector<8x8xf32>
    %33 = arith.mulf %28, %32 : vector<8x8xf32>
    %cst_14 = arith.constant dense<0.000000e+00> : vector<8x16xf32>
    %34 = tpu.matmul %33, %20, %cst_14 {dimension_numbers = #tpu.dot_dimension_numbers<[1], [0], [0], [1], [0, 0, 1, 1], [], []>} : vector<8x8xf32>, vector<8x16xf32>, vector<8x16xf32> -> vector<8x16xf32>
    %35 = vector.extract_strided_slice %14 {offsets = [0, 16], sizes = [8, 16], strides = [1, 1]} : vector<16x32xf32> to vector<8x16xf32>
    %36 = vector.extract_strided_slice %15 {offsets = [0, 16], sizes = [8, 16], strides = [1, 1]} : vector<16x32xf32> to vector<8x16xf32>
    %37 = vector.extract_strided_slice %16 {offsets = [0, 16], sizes = [8, 16], strides = [1, 1]} : vector<16x32xf32> to vector<8x16xf32>
    %cst_15 = arith.constant dense<0.000000e+00> : vector<8x8xf32>
    %38 = tpu.matmul %35, %36, %cst_15 {dimension_numbers = #tpu.dot_dimension_numbers<[1], [1], [0], [0], [0, 0, 1, 0], [], []>} : vector<8x16xf32>, vector<8x16xf32>, vector<8x8xf32> -> vector<8x8xf32>
    %39 = vector.broadcast %17 : vector<1x8xf32> to vector<8x8xf32>
    %40 = arith.addf %38, %39 : vector<8x8xf32>
    %cst_16 = arith.constant dense<0xFF800000> : vector<8xf32>
    %41 = vector.multi_reduction <maximumf>, %40, %cst_16 [1] : vector<8x8xf32> to vector<8xf32>
    %42 = vector.shape_cast %41 : vector<8xf32> to vector<8x1xf32>
    %43 = vector.broadcast %42 : vector<8x1xf32> to vector<8x8xf32>
    %44 = arith.subf %40, %43 : vector<8x8xf32>
    %45 = math.exp %44 : vector<8x8xf32>
    %cst_17 = arith.constant dense<0.000000e+00> : vector<8xf32>
    %46 = vector.multi_reduction <add>, %45, %cst_17 [1] : vector<8x8xf32> to vector<8xf32>
    %47 = vector.shape_cast %46 : vector<8xf32> to vector<8x1xf32>
    %48 = tpu.reciprocal %47 {approx = true} : vector<8x1xf32> -> vector<8x1xf32>
    %49 = vector.broadcast %48 : vector<8x1xf32> to vector<8x8xf32>
    %50 = arith.mulf %45, %49 : vector<8x8xf32>
    %cst_18 = arith.constant dense<0.000000e+00> : vector<8x16xf32>
    %51 = tpu.matmul %50, %37, %cst_18 {dimension_numbers = #tpu.dot_dimension_numbers<[1], [0], [0], [1], [0, 0, 1, 1], [], []>} : vector<8x8xf32>, vector<8x16xf32>, vector<8x16xf32> -> vector<8x16xf32>
    %52 = tpu.concatenate %34, %51 in 1 : vector<8x16xf32>, vector<8x16xf32> -> vector<8x32xf32>
    %53 = vector.extract_strided_slice %4 {offsets = [1, 0], sizes = [1, 8], strides = [1, 1]} : vector<2x8xf32> to vector<1x8xf32>
    %54 = vector.extract_strided_slice %14 {offsets = [8, 0], sizes = [8, 16], strides = [1, 1]} : vector<16x32xf32> to vector<8x16xf32>
    %55 = vector.extract_strided_slice %15 {offsets = [8, 0], sizes = [8, 16], strides = [1, 1]} : vector<16x32xf32> to vector<8x16xf32>
    %56 = vector.extract_strided_slice %16 {offsets = [8, 0], sizes = [8, 16], strides = [1, 1]} : vector<16x32xf32> to vector<8x16xf32>
    %cst_19 = arith.constant dense<0.000000e+00> : vector<8x8xf32>
    %57 = tpu.matmul %54, %55, %cst_19 {dimension_numbers = #tpu.dot_dimension_numbers<[1], [1], [0], [0], [0, 0, 1, 0], [], []>} : vector<8x16xf32>, vector<8x16xf32>, vector<8x8xf32> -> vector<8x8xf32>
    %58 = vector.broadcast %53 : vector<1x8xf32> to vector<8x8xf32>
    %59 = arith.addf %57, %58 : vector<8x8xf32>
    %cst_20 = arith.constant dense<0xFF800000> : vector<8xf32>
    %60 = vector.multi_reduction <maximumf>, %59, %cst_20 [1] : vector<8x8xf32> to vector<8xf32>
    %61 = vector.shape_cast %60 : vector<8xf32> to vector<8x1xf32>
    %62 = vector.broadcast %61 : vector<8x1xf32> to vector<8x8xf32>
    %63 = arith.subf %59, %62 : vector<8x8xf32>
    %64 = math.exp %63 : vector<8x8xf32>
    %cst_21 = arith.constant dense<0.000000e+00> : vector<8xf32>
    %65 = vector.multi_reduction <add>, %64, %cst_21 [1] : vector<8x8xf32> to vector<8xf32>
    %66 = vector.shape_cast %65 : vector<8xf32> to vector<8x1xf32>
    %67 = tpu.reciprocal %66 {approx = true} : vector<8x1xf32> -> vector<8x1xf32>
    %68 = vector.broadcast %67 : vector<8x1xf32> to vector<8x8xf32>
    %69 = arith.mulf %64, %68 : vector<8x8xf32>
    %cst_22 = arith.constant dense<0.000000e+00> : vector<8x16xf32>
    %70 = tpu.matmul %69, %56, %cst_22 {dimension_numbers = #tpu.dot_dimension_numbers<[1], [0], [0], [1], [0, 0, 1, 1], [], []>} : vector<8x8xf32>, vector<8x16xf32>, vector<8x16xf32> -> vector<8x16xf32>
    %71 = vector.extract_strided_slice %14 {offsets = [8, 16], sizes = [8, 16], strides = [1, 1]} : vector<16x32xf32> to vector<8x16xf32>
    %72 = vector.extract_strided_slice %15 {offsets = [8, 16], sizes = [8, 16], strides = [1, 1]} : vector<16x32xf32> to vector<8x16xf32>
    %73 = vector.extract_strided_slice %16 {offsets = [8, 16], sizes = [8, 16], strides = [1, 1]} : vector<16x32xf32> to vector<8x16xf32>
    %cst_23 = arith.constant dense<0.000000e+00> : vector<8x8xf32>
    %74 = tpu.matmul %71, %72, %cst_23 {dimension_numbers = #tpu.dot_dimension_numbers<[1], [1], [0], [0], [0, 0, 1, 0], [], []>} : vector<8x16xf32>, vector<8x16xf32>, vector<8x8xf32> -> vector<8x8xf32>
    %75 = vector.broadcast %53 : vector<1x8xf32> to vector<8x8xf32>
    %76 = arith.addf %74, %75 : vector<8x8xf32>
    %cst_24 = arith.constant dense<0xFF800000> : vector<8xf32>
    %77 = vector.multi_reduction <maximumf>, %76, %cst_24 [1] : vector<8x8xf32> to vector<8xf32>
    %78 = vector.shape_cast %77 : vector<8xf32> to vector<8x1xf32>
    %79 = vector.broadcast %78 : vector<8x1xf32> to vector<8x8xf32>
    %80 = arith.subf %76, %79 : vector<8x8xf32>
    %81 = math.exp %80 : vector<8x8xf32>
    %cst_25 = arith.constant dense<0.000000e+00> : vector<8xf32>
    %82 = vector.multi_reduction <add>, %81, %cst_25 [1] : vector<8x8xf32> to vector<8xf32>
    %83 = vector.shape_cast %82 : vector<8xf32> to vector<8x1xf32>
    %84 = tpu.reciprocal %83 {approx = true} : vector<8x1xf32> -> vector<8x1xf32>
    %85 = vector.broadcast %84 : vector<8x1xf32> to vector<8x8xf32>
    %86 = arith.mulf %81, %85 : vector<8x8xf32>
    %cst_26 = arith.constant dense<0.000000e+00> : vector<8x16xf32>
    %87 = tpu.matmul %86, %73, %cst_26 {dimension_numbers = #tpu.dot_dimension_numbers<[1], [0], [0], [1], [0, 0, 1, 1], [], []>} : vector<8x8xf32>, vector<8x16xf32>, vector<8x16xf32> -> vector<8x16xf32>
    %88 = tpu.concatenate %70, %87 in 1 : vector<8x16xf32>, vector<8x16xf32> -> vector<8x32xf32>
    %89 = tpu.concatenate %52, %88 in 0 : vector<8x32xf32>, vector<8x32xf32> -> vector<16x32xf32>
    %c0_27 = arith.constant 0 : index
    %c0_28 = arith.constant 0 : index
    %c0_29 = arith.constant 0 : index
    %90 = vector.load %arg7[%c0_27, %c0_28, %c0_29] : memref<1x32x32xf32, #tpu.memory_space<vmem>>, vector<1x32x32xf32>
    %91 = vector.shape_cast %90 : vector<1x32x32xf32> to vector<32x32xf32>
    %cst_30 = arith.constant dense<0.000000e+00> : vector<16x32xf32>
    %92 = tpu.matmul %89, %91, %cst_30 {dimension_numbers = #tpu.dot_dimension_numbers<[1], [0], [0], [1], [0, 0, 1, 1], [], []>} : vector<16x32xf32>, vector<32x32xf32>, vector<16x32xf32> -> vector<16x32xf32>
    %c0_31 = arith.constant 0 : index
    %c0_32 = arith.constant 0 : index
    %c0_33 = arith.constant 0 : index
    %93 = vector.load %arg8[%c0_31, %c0_32, %c0_33] : memref<1x1x32xf32, #tpu.memory_space<vmem>>, vector<1x1x32xf32>
    %94 = vector.shape_cast %93 : vector<1x1x32xf32> to vector<1x32xf32>
    %95 = vector.broadcast %94 : vector<1x32xf32> to vector<16x32xf32>
    %96 = arith.addf %92, %95 : vector<16x32xf32>
    %97 = arith.addf %96, %3 : vector<16x32xf32>
    %c0_34 = arith.constant 0 : index
    %c0_35 = arith.constant 0 : index
    %c0_36 = arith.constant 0 : index
    %98 = vector.load %arg9[%c0_34, %c0_35, %c0_36] : memref<1x1x32xf32, #tpu.memory_space<vmem>>, vector<1x1x32xf32>
    %99 = vector.shape_cast %98 : vector<1x1x32xf32> to vector<1x32xf32>
    %c0_37 = arith.constant 0 : index
    %c0_38 = arith.constant 0 : index
    %c0_39 = arith.constant 0 : index
    %100 = vector.load %arg10[%c0_37, %c0_38, %c0_39] : memref<1x1x32xf32, #tpu.memory_space<vmem>>, vector<1x1x32xf32>
    %101 = vector.shape_cast %100 : vector<1x1x32xf32> to vector<1x32xf32>
    %cst_40 = arith.constant dense<0.000000e+00> : vector<16xf32>
    %102 = vector.multi_reduction <add>, %97, %cst_40 [1] : vector<16x32xf32> to vector<16xf32>
    %103 = vector.shape_cast %102 : vector<16xf32> to vector<16x1xf32>
    %cst_41 = arith.constant 3.200000e+01 : f32
    %104 = vector.broadcast %cst_41 : f32 to vector<16x1xf32>
    %105 = arith.divf %103, %104 : vector<16x1xf32>
    %106 = vector.broadcast %105 : vector<16x1xf32> to vector<16x32xf32>
    %107 = arith.subf %97, %106 : vector<16x32xf32>
    %108 = arith.mulf %107, %107 : vector<16x32xf32>
    %cst_42 = arith.constant dense<0.000000e+00> : vector<16xf32>
    %109 = vector.multi_reduction <add>, %108, %cst_42 [1] : vector<16x32xf32> to vector<16xf32>
    %110 = vector.shape_cast %109 : vector<16xf32> to vector<16x1xf32>
    %cst_43 = arith.constant 3.200000e+01 : f32
    %111 = vector.broadcast %cst_43 : f32 to vector<16x1xf32>
    %112 = arith.divf %110, %111 : vector<16x1xf32>
    %cst_44 = arith.constant 9.99999996E-13 : f32
    %113 = vector.broadcast %cst_44 : f32 to vector<16x1xf32>
    %114 = arith.addf %112, %113 : vector<16x1xf32>
    %115 = math.rsqrt %114 : vector<16x1xf32>
    %116 = vector.broadcast %115 : vector<16x1xf32> to vector<16x32xf32>
    %117 = arith.mulf %107, %116 : vector<16x32xf32>
    %118 = vector.broadcast %99 : vector<1x32xf32> to vector<16x32xf32>
    %119 = arith.mulf %117, %118 : vector<16x32xf32>
    %120 = vector.broadcast %101 : vector<1x32xf32> to vector<16x32xf32>
    %121 = arith.addf %119, %120 : vector<16x32xf32>
    %c0_45 = arith.constant 0 : index
    %c0_46 = arith.constant 0 : index
    %c0_47 = arith.constant 0 : index
    %122 = vector.load %arg11[%c0_45, %c0_46, %c0_47] : memref<1x32x64xf32, #tpu.memory_space<vmem>>, vector<1x32x64xf32>
    %123 = vector.shape_cast %122 : vector<1x32x64xf32> to vector<32x64xf32>
    %cst_48 = arith.constant dense<0.000000e+00> : vector<16x64xf32>
    %124 = tpu.matmul %121, %123, %cst_48 {dimension_numbers = #tpu.dot_dimension_numbers<[1], [0], [0], [1], [0, 0, 1, 1], [], []>} : vector<16x32xf32>, vector<32x64xf32>, vector<16x64xf32> -> vector<16x64xf32>
    %c0_49 = arith.constant 0 : index
    %c0_50 = arith.constant 0 : index
    %c0_51 = arith.constant 0 : index
    %125 = vector.load %arg12[%c0_49, %c0_50, %c0_51] : memref<1x1x64xf32, #tpu.memory_space<vmem>>, vector<1x1x64xf32>
    %126 = vector.shape_cast %125 : vector<1x1x64xf32> to vector<1x64xf32>
    %127 = vector.broadcast %126 : vector<1x64xf32> to vector<16x64xf32>
    %128 = arith.addf %124, %127 : vector<16x64xf32>
    %cst_52 = arith.constant 5.000000e-01 : f32
    %129 = vector.broadcast %cst_52 : f32 to vector<16x64xf32>
    %130 = arith.mulf %129, %128 : vector<16x64xf32>
    %cst_53 = arith.constant 4.471500e-02 : f32
    %131 = vector.broadcast %cst_53 : f32 to vector<16x64xf32>
    %132 = arith.mulf %131, %128 : vector<16x64xf32>
    %133 = arith.mulf %132, %128 : vector<16x64xf32>
    %134 = arith.mulf %133, %128 : vector<16x64xf32>
    %135 = arith.addf %128, %134 : vector<16x64xf32>
    %cst_54 = arith.constant 0.797884583 : f32
    %136 = vector.broadcast %cst_54 : f32 to vector<16x64xf32>
    %137 = arith.mulf %136, %135 : vector<16x64xf32>
    %138 = math.tanh %137 : vector<16x64xf32>
    %cst_55 = arith.constant 1.000000e+00 : f32
    %139 = vector.broadcast %cst_55 : f32 to vector<16x64xf32>
    %140 = arith.addf %139, %138 : vector<16x64xf32>
    %141 = arith.mulf %130, %140 : vector<16x64xf32>
    %c0_56 = arith.constant 0 : index
    %c0_57 = arith.constant 0 : index
    %c0_58 = arith.constant 0 : index
    %142 = vector.load %arg13[%c0_56, %c0_57, %c0_58] : memref<1x64x32xf32, #tpu.memory_space<vmem>>, vector<1x64x32xf32>
    %143 = vector.shape_cast %142 : vector<1x64x32xf32> to vector<64x32xf32>
    %cst_59 = arith.constant dense<0.000000e+00> : vector<16x32xf32>
    %144 = tpu.matmul %141, %143, %cst_59 {dimension_numbers = #tpu.dot_dimension_numbers<[1], [0], [0], [1], [0, 0, 1, 1], [], []>} : vector<16x64xf32>, vector<64x32xf32>, vector<16x32xf32> -> vector<16x32xf32>
    %c0_60 = arith.constant 0 : index
    %c0_61 = arith.constant 0 : index
    %c0_62 = arith.constant 0 : index
    %145 = vector.load %arg14[%c0_60, %c0_61, %c0_62] : memref<1x1x32xf32, #tpu.memory_space<vmem>>, vector<1x1x32xf32>
    %146 = vector.shape_cast %145 : vector<1x1x32xf32> to vector<1x32xf32>
    %147 = vector.broadcast %146 : vector<1x32xf32> to vector<16x32xf32>
    %148 = arith.addf %144, %147 : vector<16x32xf32>
    %149 = arith.addf %148, %121 : vector<16x32xf32>
    %c0_63 = arith.constant 0 : index
    %c0_64 = arith.constant 0 : index
    %c0_65 = arith.constant 0 : index
    %150 = vector.load %arg15[%c0_63, %c0_64, %c0_65] : memref<1x1x32xf32, #tpu.memory_space<vmem>>, vector<1x1x32xf32>
    %151 = vector.shape_cast %150 : vector<1x1x32xf32> to vector<1x32xf32>
    %c0_66 = arith.constant 0 : index
    %c0_67 = arith.constant 0 : index
    %c0_68 = arith.constant 0 : index
    %152 = vector.load %arg16[%c0_66, %c0_67, %c0_68] : memref<1x1x32xf32, #tpu.memory_space<vmem>>, vector<1x1x32xf32>
    %153 = vector.shape_cast %152 : vector<1x1x32xf32> to vector<1x32xf32>
    %cst_69 = arith.constant dense<0.000000e+00> : vector<16xf32>
    %154 = vector.multi_reduction <add>, %149, %cst_69 [1] : vector<16x32xf32> to vector<16xf32>
    %155 = vector.shape_cast %154 : vector<16xf32> to vector<16x1xf32>
    %cst_70 = arith.constant 3.200000e+01 : f32
    %156 = vector.broadcast %cst_70 : f32 to vector<16x1xf32>
    %157 = arith.divf %155, %156 : vector<16x1xf32>
    %158 = vector.broadcast %157 : vector<16x1xf32> to vector<16x32xf32>
    %159 = arith.subf %149, %158 : vector<16x32xf32>
    %160 = arith.mulf %159, %159 : vector<16x32xf32>
    %cst_71 = arith.constant dense<0.000000e+00> : vector<16xf32>
    %161 = vector.multi_reduction <add>, %160, %cst_71 [1] : vector<16x32xf32> to vector<16xf32>
    %162 = vector.shape_cast %161 : vector<16xf32> to vector<16x1xf32>
    %cst_72 = arith.constant 3.200000e+01 : f32
    %163 = vector.broadcast %cst_72 : f32 to vector<16x1xf32>
    %164 = arith.divf %162, %163 : vector<16x1xf32>
    %cst_73 = arith.constant 9.99999996E-13 : f32
    %165 = vector.broadcast %cst_73 : f32 to vector<16x1xf32>
    %166 = arith.addf %164, %165 : vector<16x1xf32>
    %167 = math.rsqrt %166 : vector<16x1xf32>
    %168 = vector.broadcast %167 : vector<16x1xf32> to vector<16x32xf32>
    %169 = arith.mulf %159, %168 : vector<16x32xf32>
    %170 = vector.broadcast %151 : vector<1x32xf32> to vector<16x32xf32>
    %171 = arith.mulf %169, %170 : vector<16x32xf32>
    %172 = vector.broadcast %153 : vector<1x32xf32> to vector<16x32xf32>
    %173 = arith.addf %171, %172 : vector<16x32xf32>
    %c0_74 = arith.constant 0 : index
    %c0_75 = arith.constant 0 : index
    %174 = vector.load %arg20[%c0_74, %c0_75] : memref<16x32xf32, #tpu.memory_space<vmem>>, vector<16x32xf32>
    tpu.vector_store %arg20[%c0_74, %c0_75], %173 {strides = array<i32>} : memref<16x32xf32, #tpu.memory_space<vmem>>, vector<16x32xf32>,
    %c1_i32 = arith.constant 1 : i32
    %175 = arith.cmpi eq, %arg0, %c1_i32 : i32
    %176 = arith.extui %175 : i1 to i32
    %c0_i32_76 = arith.constant 0 : i32
    %177 = arith.cmpi ne, %176, %c0_i32_76 : i32
    scf.if %177 {
      %178 = vector.extract_strided_slice %173 {offsets = [0, 0], sizes = [1, 32], strides = [1, 1]} : vector<16x32xf32> to vector<1x32xf32>
      %179 = vector.extract_strided_slice %173 {offsets = [8, 0], sizes = [1, 32], strides = [1, 1]} : vector<16x32xf32> to vector<1x32xf32>
      %180 = tpu.concatenate %178, %179 in 0 : vector<1x32xf32>, vector<1x32xf32> -> vector<2x32xf32>
      %c0_77 = arith.constant 0 : index
      %c0_78 = arith.constant 0 : index
      %181 = vector.load %arg17[%c0_77, %c0_78] : memref<32x32xf32, #tpu.memory_space<vmem>>, vector<32x32xf32>
      %cst_79 = arith.constant dense<0.000000e+00> : vector<2x32xf32>
      %182 = tpu.matmul %180, %181, %cst_79 {dimension_numbers = #tpu.dot_dimension_numbers<[1], [0], [0], [1], [0, 0, 1, 1], [], []>} : vector<2x32xf32>, vector<32x32xf32>, vector<2x32xf32> -> vector<2x32xf32>
      %c0_80 = arith.constant 0 : index
      %c0_81 = arith.constant 0 : index
      %183 = vector.load %arg18[%c0_80, %c0_81] : memref<1x32xf32, #tpu.memory_space<vmem>>, vector<1x32xf32>
      %184 = vector.broadcast %183 : vector<1x32xf32> to vector<2x32xf32>
      %185 = arith.addf %182, %184 : vector<2x32xf32>
      %186 = math.tanh %185 : vector<2x32xf32>
      %c0_82 = arith.constant 0 : index
      %c0_83 = arith.constant 0 : index
      %187 = vector.load %arg19[%c0_82, %c0_83] : memref<2x32xf32, #tpu.memory_space<vmem>>, vector<2x32xf32>
      tpu.vector_store %arg19[%c0_82, %c0_83], %186 {strides = array<i32>} : memref<2x32xf32, #tpu.memory_space<vmem>>, vector<2x32xf32>,
    } else {
    }
    return
  }
  func.func @transform_0(%arg0: i32) -> (i32, i32) {
    %c0_i32 = arith.constant 0 : i32
    %c0_i32_0 = arith.constant 0 : i32
    %c0_i32_1 = arith.constant 0 : i32
    return %c0_i32, %c0_i32_0 : i32, i32
  }
  func.func @transform_1(%arg0: i32) -> (i32, i32) {
    %c0_i32 = arith.constant 0 : i32
    %c0_i32_0 = arith.constant 0 : i32
    %c0_i32_1 = arith.constant 0 : i32
    return %c0_i32, %c0_i32_0 : i32, i32
  }
  func.func @transform_2(%arg0: i32) -> (i32, i32) {
    %c0_i32 = arith.constant 0 : i32
    %c0_i32_0 = arith.constant 0 : i32
    %c0_i32_1 = arith.constant 0 : i32
    return %c0_i32, %c0_i32_0 : i32, i32
  }
  func.func @transform_3(%arg0: i32) -> (i32, i32) {
    %c0_i32 = arith.constant 0 : i32
    %c0_i32_0 = arith.constant 0 : i32
    %c0_i32_1 = arith.constant 0 : i32
    return %c0_i32, %c0_i32_0 : i32, i32
  }
  func.func @transform_4(%arg0: i32) -> (i32, i32, i32) {
    %c0_i32 = arith.constant 0 : i32
    %c0_i32_0 = arith.constant 0 : i32
    %c0_i32_1 = arith.constant 0 : i32
    return %arg0, %c0_i32, %c0_i32_0 : i32, i32, i32
  }
  func.func @transform_5(%arg0: i32) -> (i32, i32, i32) {
    %c0_i32 = arith.constant 0 : i32
    %c0_i32_0 = arith.constant 0 : i32
    %c0_i32_1 = arith.constant 0 : i32
    return %arg0, %c0_i32, %c0_i32_0 : i32, i32, i32
  }
  func.func @transform_6(%arg0: i32) -> (i32, i32, i32) {
    %c0_i32 = arith.constant 0 : i32
    %c0_i32_0 = arith.constant 0 : i32
    %c0_i32_1 = arith.constant 0 : i32
    return %arg0, %c0_i32, %c0_i32_0 : i32, i32, i32
  }
  func.func @transform_7(%arg0: i32) -> (i32, i32, i32) {
    %c0_i32 = arith.constant 0 : i32
    %c0_i32_0 = arith.constant 0 : i32
    %c0_i32_1 = arith.constant 0 : i32
    return %arg0, %c0_i32, %c0_i32_0 : i32, i32, i32
  }
  func.func @transform_8(%arg0: i32) -> (i32, i32, i32) {
    %c0_i32 = arith.constant 0 : i32
    %c0_i32_0 = arith.constant 0 : i32
    %c0_i32_1 = arith.constant 0 : i32
    return %arg0, %c0_i32, %c0_i32_0 : i32, i32, i32
  }
  func.func @transform_9(%arg0: i32) -> (i32, i32, i32) {
    %c0_i32 = arith.constant 0 : i32
    %c0_i32_0 = arith.constant 0 : i32
    %c0_i32_1 = arith.constant 0 : i32
    return %arg0, %c0_i32, %c0_i32_0 : i32, i32, i32
  }
  func.func @transform_10(%arg0: i32) -> (i32, i32, i32) {
    %c0_i32 = arith.constant 0 : i32
    %c0_i32_0 = arith.constant 0 : i32
    %c0_i32_1 = arith.constant 0 : i32
    return %arg0, %c0_i32, %c0_i32_0 : i32, i32, i32
  }
  func.func @transform_11(%arg0: i32) -> (i32, i32, i32) {
    %c0_i32 = arith.constant 0 : i32
    %c0_i32_0 = arith.constant 0 : i32
    %c0_i32_1 = arith.constant 0 : i32
    return %arg0, %c0_i32, %c0_i32_0 : i32, i32, i32
  }
  func.func @transform_12(%arg0: i32) -> (i32, i32, i32) {
    %c0_i32 = arith.constant 0 : i32
    %c0_i32_0 = arith.constant 0 : i32
    %c0_i32_1 = arith.constant 0 : i32
    return %arg0, %c0_i32, %c0_i32_0 : i32, i32, i32
  }
  func.func @transform_13(%arg0: i32) -> (i32, i32, i32) {
    %c0_i32 = arith.constant 0 : i32
    %c0_i32_0 = arith.constant 0 : i32
    %c0_i32_1 = arith.constant 0 : i32
    return %arg0, %c0_i32, %c0_i32_0 : i32, i32, i32
  }
  func.func @transform_14(%arg0: i32) -> (i32, i32, i32) {
    %c0_i32 = arith.constant 0 : i32
    %c0_i32_0 = arith.constant 0 : i32
    %c0_i32_1 = arith.constant 0 : i32
    return %arg0, %c0_i32, %c0_i32_0 : i32, i32, i32
  }
  func.func @transform_15(%arg0: i32) -> (i32, i32, i32) {
    %c0_i32 = arith.constant 0 : i32
    %c0_i32_0 = arith.constant 0 : i32
    %c0_i32_1 = arith.constant 0 : i32
    return %arg0, %c0_i32, %c0_i32_0 : i32, i32, i32
  }
  func.func @transform_16(%arg0: i32) -> (i32, i32) {
    %c0_i32 = arith.constant 0 : i32
    %c0_i32_0 = arith.constant 0 : i32
    %c0_i32_1 = arith.constant 0 : i32
    return %c0_i32, %c0_i32_0 : i32, i32
  }
  func.func @transform_17(%arg0: i32) -> (i32, i32) {
    %c0_i32 = arith.constant 0 : i32
    %c0_i32_0 = arith.constant 0 : i32
    %c0_i32_1 = arith.constant 0 : i32
    return %c0_i32, %c0_i32_0 : i32, i32
  }
  func.func @transform_18(%arg0: i32) -> (i32, i32) {
    %c0_i32 = arith.constant 0 : i32
    %c0_i32_0 = arith.constant 0 : i32
    %c0_i32_1 = arith.constant 0 : i32
    return %c0_i32, %c0_i32_0 : i32, i32
  }
}

</mosaic_0001>

<bundles_post_ra>
// kernel: bert_classifier_forward.1
= control target key start
LH: loop header
LB: loop body
LE: loop exit
PB: predicated region body
PF: predicated region fallthrough
CT: control target
= control target key end

     0   :  { %s2608_s27 = smov 0   ;;  %s2867_s0 = inlined_call_operand.vmem [shape: f32[16,32], index: 0, kind: input, shape index: {}]   ;;  %s2868_s1 = inlined_call_operand.vmem [shape: f32[2,8], index: 1, kind: input, shape index: {}]   ;;  %s2869_s2 = inlined_call_operand.vmem [shape: f32[1,32], index: 2, kind: input, shape index: {}]   ;;  %s2870_s3 = inlined_call_operand.vmem [shape: f32[1,32], index: 3, kind: input, shape index: {}, may-alias: {3,17}]   ;;  %s2871_s4 = inlined_call_operand.vmem [shape: f32[2,32,96], index: 4, kind: input, shape index: {}]   ;;  %s2872_s5 = inlined_call_operand.vmem [shape: f32[2,1,96], index: 5, kind: input, shape index: {}]   ;;  %s2873_s6 = inlined_call_operand.vmem [shape: f32[2,32,32], index: 6, kind: input, shape index: {}]   ;;  %s2874_s7 = inlined_call_operand.vmem [shape: f32[2,1,32], index: 7, kind: input, shape index: {}, may-alias: {7,9,13,15}]   ;;  %s2875_s8 = inlined_call_operand.vmem [shape: f32[2,1,32], index: 8, kind: input, shape index: {}, may-alias: {8,14}]   ;;  %s2876_s9 = inlined_call_operand.vmem [shape: f32[2,1,32], index: 9, kind: input, shape index: {}, may-alias: {7,9,13,15}]   ;;  %s2877_s10 = inlined_call_operand.vmem [shape: f32[2,32,64], index: 10, kind: input, shape index: {}]   ;;  %s2878_s11 = inlined_call_operand.vmem [shape: f32[2,1,64], index: 11, kind: input, shape index: {}]   ;;  %s2879_s12 = inlined_call_operand.vmem [shape: f32[2,64,32], index: 12, kind: input, shape index: {}]   ;;  %s2880_s13 = inlined_call_operand.vmem [shape: f32[2,1,32], index: 13, kind: input, shape index: {}, may-alias: {7,9,13,15}]   ;;  %s2881_s14 = inlined_call_operand.vmem [shape: f32[2,1,32], index: 14, kind: input, shape index: {}, may-alias: {8,14}]   ;;  %s2882_s15 = inlined_call_operand.vmem [shape: f32[2,1,32], index: 15, kind: input, shape index: {}, may-alias: {7,9,13,15}]   ;;  %s2883_s16 = inlined_call_operand.vmem [shape: f32[32,32], index: 16, kind: input, shape index: {}]   ;;  %s2884_s17 = inlined_call_operand.vmem [shape: f32[1,32], index: 17, kind: input, shape index: {}, may-alias: {3,17}]   ;;  %s2885_s18 = inlined_call_operand.vmem [shape: f32[2,32], index: 18, kind: output, shape index: {}]  }
   0x1   :  { %2890 = sst [smem:[#allocation5_spill]] %s2867_s0 }
   0x2   :  { %2891 = sst [smem:[#allocation6_spill]] %s2868_s1 }
   0x3   :  { %2892 = sst [smem:[#allocation7_spill]] %s2869_s2 }
   0x4   :  { %2893 = sst [smem:[#allocation8_spill]] %s2871_s4 }
   0x5   :  { %2894 = sst [smem:[#allocation9_spill]] %s2873_s6 }
   0x6   :  { %2895 = sst [smem:[#allocation10_spill]] %s2883_s16 }
   0x7   :  { %2896 = sst [smem:[#allocation11_spill]] %s2884_s17 }
   0x8   :  { %2897 = sst [smem:[#allocation12_spill]] %s2885_s18 }
   0x9 LB: > { %2898 = sst [smem:[#allocation3_spill]] %s2500_s27  ;;  %s2614_s28 = sadd.s32 4294967295, %s2500_s27   ;;  %s2500_s27 = sphi %s2608_s27, %s28_s27  }
   0xa   : > { %p2194_p0 = scmp.ge.s32.totalorder %s2500_s27, 1  ;;  %p601_p1 = scmp.lt.s32.totalorder %s2500_s27, 3 }
   0xc   : > { %p602_p2 = pnand %p2194_p0, %p601_p1 }
   0xe   : > { %605 = sbr.rel (%p602_p2) target bundleno = 3094 (0xc16), region = 92 }
  0x15   : > { %p689_p3 = scmp.lt.s32.totalorder %s2614_s28, 1  ;;  %s2899_s4 = sld [smem:[#allocation8_spill]] }
  0x16   : > { %s2900_s6 = sld [smem:[#allocation9_spill]]  ;;  %p2203_p4 = scmp.ne.s32.totalorder %s2614_s28, 0 }
  0x17   : > { %s2620_s29 = scalar_select %p689_p3, %s2614_s28, 1 }
  0x18   : > { %736 = sbr.rel (%p2203_p4) target bundleno = 349 (0x15d), region = 96  ;;  %s2902_s25 = sld [smem:[#allocation5_spill]] (!%p2203_p4)  ;;  %vm741_vm0 = vcmask (!%p2203_p4), 261120   ;;  %v2205_v23 = vld [vmem:[%s2870_s3] ss:$0 sm:$0xff] (!%p2203_p4) }
  0x19   : > { %s2239_s30 = sshll.u32 %s2620_s29, 5  ;;  %s726_s0 = scalar_lea.vmem %s2880_s13, %s2620_s29 }
  0x1a   : > { %s729_s20 = scalar_lea.vmem %s2881_s14, %s2620_s29  ;;  %s732_s16 = scalar_lea.vmem %s2882_s15, %s2620_s29 }
  0x1b   : > { %s2630_s22 = scalar_lea.vmem %s2899_s4, %s2239_s30  ;;  %s2652_s4 = scalar_lea.vmem %s2877_s10, %s2239_s30 }
  0x1c   : > { %s2635_s24 = scalar_lea.vmem %s2900_s6, %s2239_s30  ;;  %s718_s6 = scalar_lea.vmem %s2878_s11, %s2620_s29 }
  0x1d   : > { %2901 = sst [smem:[#allocation4_spill]] %s2635_s24  ;;  %s2242_s24 = sshll.u32 %s2620_s29, 6 }
  0x1e   : > { %s2662_s27 = scalar_lea.vmem %s2879_s12, %s2242_s24  ;;  %v737_v0 = vld [vmem:[%s2902_s25] sm:$0xff] (!%p2203_p4)  ;;  %v738_v1 = vld [vmem:[%s2902_s25 + $0x8] sm:$0xff] (!%p2203_p4)  ;;  %s2903_s18 = sld [smem:[#allocation7_spill]] (!%p2203_p4) }
  0x1f   : > { %v742_v2 = vsel %vm741_vm0, %v737_v0, 0.0  ;;  %v745_v3 = vsel %vm741_vm0, %v738_v1, 0.0 }
  0x20   : > { %743 = vadd.xlane.f32.xlu0 %v742_v2 }
  0x24   : > { %746 = vadd.xlane.f32.xlu0 %v745_v3  ;;  %v2204_v21 = vld [vmem:[%s2903_s18] ss:$0 sm:$0xff] }
  0xad   : > { %v744_v4 = vpop.xlane.xlu0 %743 }
  0xae   : > { %v749_v5 = vmul.f32 0.03125, %v744_v4 }
  0xb0   : > { %v751_v6 = vsub.f32 %v737_v0, %v749_v5 }
  0xb1   : > { %v747_v7 = vpop.xlane.xlu0 %746 }
  0xb2   : > { %v750_v8 = vmul.f32 0.03125, %v747_v7  ;;  %v753_v9 = vmul.f32 %v751_v6, %v751_v6 }
  0xb4   : > { %v752_v10 = vsub.f32 %v738_v1, %v750_v8  ;;  %v755_v11 = vsel %vm741_vm0, %v753_v9, 0.0 }
  0xb5   : > { %756 = vadd.xlane.f32.xlu1 %v755_v11 }
  0xb6   : > { %v754_v12 = vmul.f32 %v752_v10, %v752_v10 }
  0xb8   : > { %v758_v13 = vsel %vm741_vm0, %v754_v12, 0.0 }
  0xb9   : > { %759 = vadd.xlane.f32.xlu1 %v758_v13 }
 0x142   : > { %v757_v14 = vpop.xlane.xlu1 %756 }
 0x143   : > { %v761_v15 = vmul.f32 0.03125, %v757_v14 }
 0x145   : > { %v763_v16 = vadd.f32 1e-12, %v761_v15 }
 0x146   : > { %v760_v17 = vpop.xlane.xlu1 %759 }
 0x147   : > { %2460 = vrsqrt.f32 %v763_v16  ;;  %v762_v18 = vmul.f32 0.03125, %v760_v17 }
 0x149   : > { %v764_v19 = vadd.f32 1e-12, %v762_v18 }
 0x14b   : > { %2462 = vrsqrt.f32 %v764_v19 }
 0x151   : > { %v2461_v20 = vpop.eup %2460 }
 0x152   : > { %v767_v22 = vmul.f32 %v2461_v20, %v751_v6 }
 0x154   : > { %v775_v24 = vmul.f32 %v2204_v21, %v767_v22 }
 0x155   : > { %v2463_v25 = vpop.eup %2462 }
 0x156   : > { %v783_v26 = vadd.f32 %v2205_v23, %v775_v24  ;;  %v768_v27 = vmul.f32 %v2463_v25, %v752_v10 }
 0x158   : > { %785 = vst.msk [vmem:[#allocation2] sm:$0xff] %vm741_vm0, %v783_v26  ;;  %v776_v28 = vmul.f32 %v2204_v21, %v768_v27 }
 0x15a   : > { %v784_v29 = vadd.f32 %v2205_v23, %v776_v28 }
 0x15c   : > { %786 = vst.msk [vmem:[#allocation2 + $0x8] sm:$0xff] %vm741_vm0, %v784_v29 }
 0x15d PF: > { %v790_v30 = vld [vmem:[%s2630_s22] sm:$0xff]  ;;  %v791_v31 = vld [vmem:[%s2630_s22 + $0x8] sm:$0xff]  ;;  %v792_v32 = vld [vmem:[%s2630_s22 + $0x10] sm:$0xff]  ;;  %vm801_vm1 = vcmask 261120   ;;  %v2502_v38 = vmov 0.0   ;;  %vm2503_vm2 = vmmov 0   ;;  %s2904_s2 = scalar_lea.vmem %s2872_s5, %s2620_s29  ;;  %v885_v52 = vlaneseq  ;;  %s2908_s17 = scalar_lea.vmem %s2875_s8, %s2620_s29 }
 0x15e   : > { %v2395_v33 = vpack.c.bf16 %v791_v31, %v790_v30  ;;  %v793_v34 = vld [vmem:[%s2630_s22 + $0x18] sm:$0xff]  ;;  %2313 = vmatprep.subr.mxu0 %v2502_v38  ;;  %2315 = vmatprep.mubr.msk.f32.mxu0 %vm2503_vm2, %v2502_v38  ;;  %v2206_v39 = vld [vmem:[%s2904_s2] ss:$0 sm:$0xff]  ;;  %s2504_s23 = smov 96   ;;  %s2505_s24 = smov 112   ;;  %vm892_vm3 = vcmask 130048  }
 0x15f   : > { %v2699_v35 = vld [vmem:[#allocation2] sm:$0xff]  ;;  %v2399_v36 = vpack.c.bf16 %v793_v34, %v792_v32  ;;  %s2506_s26 = smov 80   ;;  %v886_v53 = vshrl.u32 %v885_v52, 7  ;;  %s2905_s18 = sld [smem:[#allocation6_spill]]  ;;  %vm968_vm4 = vcmask 64512   ;;  %vm1829_vm5 = vcmask 523264  }
 0x160   : > { %2300 = vmatprep.mubr.msk.f32.mxu1 %vm801_vm1, %v2699_v35  ;;  %2396 = vmatprep.subr.bf16.mxu1 %v2395_v33  ;;  %s2507_s19 = smov 64   ;;  %s2508_s30 = smov 48  }
 0x161   : > { %2398 = vmatpush3.bf16.msra.mxu1 %v2395_v33  ;;  %v887_v54 = vsub.s32 0, %v886_v53  ;;  %v1228_v60 = vsub.s32 1, %v886_v53  ;;  %s2906_s22 = sld [smem:[#allocation4_spill]]  ;;  %s2509_s21 = smov 16  }
 0x162   : > { %2400 = vmatprep.subr.bf16.mxu1 %v2399_v36  ;;  %p2234_p5 = scmp.ne.s32.totalorder %s2614_s28, 1 }
 0x163   : > { %v2703_v37 = vld [vmem:[#allocation2 + $0x8] sm:$0xff]  ;;  %vm2511_vm6 = vmmov (!%p2234_p5), 0   ;;  %vm1966_vm7 = vcmask (!%p2234_p5), 1040384   ;;  %vm2053_vm8 = vcmask (!%p2234_p5), 254976  }
 0x165   : > { %2402 = vmatpush3.bf16.msra.mxu1 %v2399_v36  ;;  %v789_v55 = vld [vmem:[%s2905_s18] sm:$0x3] }
 0x166   : > { %2303 = vmatprep.subr.mxu1 %v2502_v38  ;;  %v888_v56 = vrot.slane %v789_v55, %v887_v54  ;;  %v1229_v1 = vrot.slane %v789_v55, %v1228_v60 }
 0x167   : > { %v1567_v53 = vld [vmem:[%s2906_s22 + $0x10] sm:$0xff]  ;;  %v1568_v54 = vld [vmem:[%s2906_s22 + $0x18] sm:$0xff] }
 0x168   : > { %2301 = vmatmul.mubr.msk.f32.vlgmr.msra.gmra.mrb[0].mxu1 %vm801_vm1, %v2703_v37  ;;  %v2407_v55 = vpack.c.bf16 %v1568_v54, %v1567_v53  ;;  %v1820_v54 = vld [vmem:[%s2662_s27 + $0x30] sm:$0xff] }
 0x169   : > { %2305 = vmatprep.mubr.msk.f32.mxu1 %vm2503_vm2, %v2502_v38 }
 0x23b   : > { %v2302_v40 = vpop.f32.mrb[0].mxu1 }
 0x23c   : > { %v874_v41 = vpop.f32.mrb[1].mxu1  ;;  %v2722_v44 = vadd.f32 %v2302_v40, %v2206_v39 }
 0x23d   : > { %v2718_v42 = vadd.f32 %v2206_v39, %v874_v41 }
 0x23e   : > { %v884_v45 = vmul.f32 0.25, %v2722_v44 }
 0x23f   : > { %890 = vrot.lane.b32.xlu0 %v2718_v42, %s2504_s23  ;;  %v883_v43 = vmul.f32 0.25, %v2718_v42 }
 0x241   : > { %1056 = vrot.lane.b32.xlu1 %v883_v43, %s2505_s24 }
 0x243   : > { %1058 = vrot.lane.b32.xlu0 %v2718_v42, %s2506_s26 }
 0x245   : > { %1231 = vrot.lane.b32.xlu1 %v2722_v44, %s2504_s23 }
 0x247   : > { %1397 = vrot.lane.b32.xlu0 %v2722_v44, %s2506_s26  ;;  %s2910_s26 = sld [smem:[#allocation10_spill]] (!%p2234_p5) }
 0x249   : > { %1395 = vrot.lane.b32.xlu1 %v884_v45, %s2505_s24  ;;  %s2907_s24 = scalar_lea.vmem %s2874_s7, %s2620_s29 }
 0x2b1   : > { %v891_v46 = vpop.permute.xlu0 %890 }
 0x2b2   : > { %2304 = vmatpush3.xpose.msk.msra.mxu1 %vm892_vm3, %v891_v46 }
 0x2b3   : > { %v1057_v47 = vpop.permute.xlu1 %1056  ;;  %2308 = vmatprep.subr.mxu1 %v2502_v38 }
 0x2b5   : > { %v1059_v48 = vpop.permute.xlu0 %1058  ;;  %2306 = vmatmul.mubr.msk.f32.vlgmr.msra.gmra.mrb[2].mxu1 %vm892_vm3, %v883_v43 }
 0x2b6   : > { %2314 = vmatpush3.xpose.msk.msra.mxu0 %vm892_vm3, %v1059_v48  ;;  %2310 = vmatprep.mubr.msk.f32.mxu1 %vm2503_vm2, %v2502_v38 }
 0x2b7   : > { %2323 = vmatprep.subr.mxu0 %v2502_v38  ;;  %v1232_v49 = vpop.permute.xlu1 %1231 }
 0x2b9   : > { %2316 = vmatmul.mubr.msk.f32.vlgmr.msra.gmra.mrb[0].mxu0 %vm892_vm3, %v1057_v47  ;;  %v1398_v50 = vpop.permute.xlu0 %1397 }
 0x2ba   : > { %2324 = vmatpush3.xpose.msk.msra.mxu0 %vm892_vm3, %v1232_v49  ;;  %2325 = vmatprep.mubr.msk.f32.mxu0 %vm2503_vm2, %v2502_v38 }
 0x2bb   : > { %2333 = vmatprep.subr.mxu0 %v2502_v38  ;;  %v1396_v51 = vpop.permute.xlu1 %1395 }
 0x2bd   : > { %2326 = vmatmul.mubr.msk.f32.vlgmr.msra.gmra.mrb[2].mxu0 %vm892_vm3, %v884_v45 }
 0x2be   : > { %2334 = vmatpush3.xpose.msk.msra.mxu0 %vm892_vm3, %v1398_v50  ;;  %2335 = vmatprep.mubr.msk.f32.mxu0 %vm2503_vm2, %v2502_v38  ;;  %v1565_v50 = vld [vmem:[%s2906_s22] sm:$0xff] }
 0x2c1   : > { %2336 = vmatmul.mubr.msk.f32.vlgmr.msra.gmra.mrb[4].mxu0 %vm892_vm3, %v1396_v51  ;;  %v1566_v51 = vld [vmem:[%s2906_s22 + $0x8] sm:$0xff] }
 0x2c2   : > { %v2403_v52 = vpack.c.bf16 %v1566_v51, %v1565_v50  ;;  %v1818_v51 = vld [vmem:[%s2662_s27 + $0x20] sm:$0xff] }
 0x2c4   : > { %2404 = vmatprep.subr.bf16.mxu0 %v2403_v52 }
 0x2c5   : > { %2406 = vmatpush3.bf16.msra.mxu0 %v2403_v52  ;;  %v1819_v52 = vld [vmem:[%s2662_s27 + $0x28] sm:$0xff] }
 0x2c6   : > { %2408 = vmatprep.subr.bf16.mxu0 %v2407_v55  ;;  %v2427_v53 = vpack.c.bf16 %v1819_v52, %v1818_v51  ;;  %v1968_v51 = vld [vmem:[%s2910_s26] sm:$0xff] (!%p2234_p5)  ;;  %v1969_v52 = vld [vmem:[%s2910_s26 + $0x8] sm:$0xff] (!%p2234_p5) }
 0x2c9   : > { %2410 = vmatpush3.bf16.msra.mxu0 %v2407_v55  ;;  %v1821_v55 = vld [vmem:[%s2662_s27 + $0x38] sm:$0xff] }
 0x388   : > { %v964_v57 = vpop.f32.mrb[2].mxu1 }
 0x389   : > { %v965_v58 = vadd.f32 %v964_v57, %v888_v56  ;;  %v2307_v59 = vpop.f32.mrb[3].mxu1 }
 0x38b   : > { %v969_v61 = vsel %vm968_vm4, %v965_v58, -inf }
 0x38c   : > { %v1130_v62 = vpop.f32.mrb[0].mxu0  ;;  %970 = vmax.xlane.f32.xlu0 %v969_v61 }
 0x38d   : > { %v1131_v63 = vadd.f32 %v1130_v62, %v888_v56  ;;  %v2317_v0 = vpop.f32.mrb[1].mxu0 }
 0x38f   : > { %v1134_v2 = vsel %vm968_vm4, %v1131_v63, -inf }
 0x390   : > { %1135 = vmax.xlane.f32.xlu1 %v1134_v2  ;;  %v1304_v3 = vpop.f32.mrb[2].mxu0 }
 0x391   : > { %v1305_v4 = vadd.f32 %v1304_v3, %v1229_v1  ;;  %v2327_v5 = vpop.f32.mrb[3].mxu0  ;;  %v2221_v3 = vld [vmem:[%s2907_s24] ss:$0 sm:$0xff] }
 0x393   : > { %v1308_v6 = vsel %vm968_vm4, %v1305_v4, -inf }
 0x394   : > { %v1469_v7 = vpop.f32.mrb[4].mxu0  ;;  %1309 = vmax.xlane.f32.xlu0 %v1308_v6 }
 0x395   : > { %v1470_v8 = vadd.f32 %v1469_v7, %v1229_v1  ;;  %v2337_v9 = vpop.f32.mrb[5].mxu0 }
 0x397   : > { %v1473_v10 = vsel %vm968_vm4, %v1470_v8, -inf }
 0x398   : > { %1474 = vmax.xlane.f32.xlu0 %v1473_v10 }
 0x3a1   : > { %980 = vrot.lane.b32.xlu1 %v2718_v42, %s2507_s19 }
 0x419   : > { %v971_v11 = vpop.xlane.xlu0 %970 }
 0x41a   : > { %v972_v12 = vsub.f32 %v965_v58, %v971_v11 }
 0x41c   : > { %v973_v13 = vmul.f32 1.442695, %v972_v12 }
 0x41d   : > { %v1136_v14 = vpop.xlane.xlu1 %1135 }
 0x41e   : > { %2464 = vpow2.f32 %v973_v13  ;;  %v1137_v15 = vsub.f32 %v1131_v63, %v1136_v14 }
 0x420   : > { %v1138_v16 = vmul.f32 1.442695, %v1137_v15 }
 0x421   : > { %v981_v17 = vpop.permute.xlu1 %980  ;;  %v1310_v18 = vpop.xlane.xlu0 %1309 }
 0x422   : > { %2466 = vpow2.f32 %v1138_v16  ;;  %v1311_v19 = vsub.f32 %v1305_v4, %v1310_v18  ;;  %2309 = vmatpush3.msra.mxu1 %v981_v17 }
 0x423   : > { %2318 = vmatprep.subr.mxu1 %v2502_v38 }
 0x424   : > { %v1312_v20 = vmul.f32 1.442695, %v1311_v19 }
 0x425   : > { %v1475_v21 = vpop.xlane.xlu0 %1474 }
 0x426   : > { %2468 = vpow2.f32 %v1312_v20  ;;  %v1476_v22 = vsub.f32 %v1470_v8, %v1475_v21  ;;  %v1704_v20 = vld [vmem:[%s2652_s4] sm:$0xff]  ;;  %v1705_v21 = vld [vmem:[%s2652_s4 + $0x8] sm:$0xff] }
 0x428   : > { %v2465_v23 = vpop.eup %2464  ;;  %v1477_v24 = vmul.f32 1.442695, %v1476_v22  ;;  %v2411_v22 = vpack.c.bf16 %v1705_v21, %v1704_v20 }
 0x429   : > { %v975_v25 = vsel %vm968_vm4, %v2465_v23, 0.0 }
 0x42a   : > { %2470 = vpow2.f32 %v1477_v24  ;;  %976 = vadd.xlane.f32.xlu1 %v975_v25  ;;  %v1707_v24 = vld [vmem:[%s2652_s4 + $0x18] sm:$0xff] }
 0x42c   : > { %v2467_v26 = vpop.eup %2466 }
 0x42d   : > { %v1140_v27 = vsel %vm968_vm4, %v2467_v26, 0.0 }
 0x42e   : > { %1141 = vadd.xlane.f32.xlu0 %v1140_v27 }
 0x430   : > { %v2469_v28 = vpop.eup %2468 }
 0x431   : > { %v1314_v29 = vsel %vm968_vm4, %v2469_v28, 0.0 }
 0x432   : > { %1315 = vadd.xlane.f32.xlu1 %v1314_v29 }
 0x434   : > { %v2471_v30 = vpop.eup %2470 }
 0x435   : > { %v1479_v31 = vsel %vm968_vm4, %v2471_v30, 0.0 }
 0x436   : > { %1480 = vadd.xlane.f32.xlu0 %v1479_v31 }
 0x443   : > { %1319 = vrot.lane.b32.xlu1 %v2722_v44, %s2507_s19  ;;  %s2909_s19 = scalar_lea.vmem %s2876_s9, %s2620_s29 }
 0x447   : > { %1484 = vrot.lane.b32.xlu1 %v2722_v44, %s2508_s30 }
 0x44c   : > { %1145 = vrot.lane.b32.xlu0 %v2718_v42, %s2508_s30  ;;  %s2911_s30 = sld [smem:[#allocation11_spill]] (!%p2234_p5) }
 0x4b7   : > { %v977_v32 = vpop.xlane.xlu1 %976 }
 0x4b8   : > { %2472 = vrcp.f32 %v977_v32 }
 0x4bb   : > { %v1142_v33 = vpop.xlane.xlu0 %1141 }
 0x4bc   : > { %2474 = vrcp.f32 %v1142_v33  ;;  %v2224_v33 = vld [vmem:[%s2908_s17] ss:$0 sm:$0xff] }
 0x4bf   : > { %v1316_v34 = vpop.xlane.xlu1 %1315 }
 0x4c0   : > { %2476 = vrcp.f32 %v1316_v34 }
 0x4c2   : > { %v2473_v36 = vpop.eup %2472 }
 0x4c3   : > { %v979_v39 = vmul.f32 %v2473_v36, %v2465_v23  ;;  %v1481_v40 = vpop.xlane.xlu0 %1480  ;;  %v1320_v44 = vpop.permute.xlu1 %1319  ;;  %v1706_v23 = vld [vmem:[%s2652_s4 + $0x10] sm:$0xff]  ;;  %v2225_v36 = vld [vmem:[%s2909_s19] ss:$0 sm:$0xff] }
 0x4c4   : > { %2478 = vrcp.f32 %v1481_v40  ;;  %v2415_v25 = vpack.c.bf16 %v1707_v24, %v1706_v23 }
 0x4c5   : > { %2311 = vmatmul.mubr.msk.f32.vlgmr.msra.gmra.mrb[4].mxu1 %vm968_vm4, %v979_v39 }
 0x4c6   : > { %v2475_v41 = vpop.eup %2474  ;;  %2320 = vmatprep.mubr.msk.f32.mxu1 %vm2503_vm2, %v2502_v38 }
 0x4c7   : > { %v1144_v43 = vmul.f32 %v2475_v41, %v2467_v26  ;;  %v1146_v45 = vpop.permute.xlu0 %1145  ;;  %v1485_v47 = vpop.permute.xlu1 %1484 }
 0x4c8   : > { %2319 = vmatpush3.msra.mxu1 %v1146_v45 }
 0x4c9   : > { %2321 = vmatmul.mubr.msk.f32.vlgmr.msra.gmra.mrb[6].mxu1 %vm968_vm4, %v1144_v43  ;;  %2328 = vmatprep.subr.mxu1 %v2502_v38 }
 0x4ca   : > { %v2477_v42 = vpop.eup %2476  ;;  %2329 = vmatpush3.msra.mxu1 %v1320_v44  ;;  %2330 = vmatprep.mubr.msk.f32.mxu1 %vm2503_vm2, %v2502_v38 }
 0x4cb   : > { %v1318_v46 = vmul.f32 %v2477_v42, %v2469_v28  ;;  %2338 = vmatprep.subr.mxu1 %v2502_v38  ;;  %v1814_v42 = vld [vmem:[%s2662_s27] sm:$0xff] }
 0x4cd   : > { %2331 = vmatmul.mubr.msk.f32.vlgmr.msra.gmra.mrb[8].mxu1 %vm968_vm4, %v1318_v46  ;;  %v1815_v46 = vld [vmem:[%s2662_s27 + $0x8] sm:$0xff] }
 0x4ce   : > { %v2479_v48 = vpop.eup %2478  ;;  %2339 = vmatpush3.msra.mxu1 %v1485_v47  ;;  %2340 = vmatprep.mubr.msk.f32.mxu1 %vm2503_vm2, %v2502_v38  ;;  %v2419_v47 = vpack.c.bf16 %v1815_v46, %v1814_v42  ;;  %v2233_v42 = vld [vmem:[%s732_s16] ss:$0 sm:$0xff] }
 0x4cf   : > { %v1483_v49 = vmul.f32 %v2479_v48, %v2471_v30  ;;  %2412 = vmatprep.subr.bf16.mxu1 %v2411_v22  ;;  %v1816_v48 = vld [vmem:[%s2662_s27 + $0x10] sm:$0xff] }
 0x4d0   : > { %2420 = vmatprep.subr.bf16.mxu0 %v2419_v47 }
 0x4d1   : > { %2341 = vmatmul.mubr.msk.f32.vlgmr.msra.gmra.mrb[10].mxu1 %vm968_vm4, %v1483_v49  ;;  %v1817_v49 = vld [vmem:[%s2662_s27 + $0x18] sm:$0xff]  ;;  %s2912_s27 = sld [smem:[#allocation12_spill]] (!%p2234_p5) }
 0x4d2   : > { %2414 = vmatpush3.bf16.msra.mxu1 %v2411_v22  ;;  %v2423_v50 = vpack.c.bf16 %v1817_v49, %v1816_v48 }
 0x4d3   : > { %2416 = vmatprep.subr.bf16.mxu1 %v2415_v25 }
 0x4d6   : > { %2418 = vmatpush3.bf16.msra.mxu1 %v2415_v25 }
 0x598   : > { %v1052_v56 = vpop.f32.mrb[4].mxu1 }
 0x599   : > { %v2312_v57 = vpop.f32.mrb[5].mxu1 }
 0x59a   : > { %v2226_v57 = vld [vmem:[%s718_s6] ss:$0 sm:$0xff] }
 0x59c   : > { %v1217_v58 = vpop.f32.mrb[6].mxu1 }
 0x59d   : > { %1222 = vrot.lane.b32.xlu0 %v1217_v58, %s2509_s21  ;;  %v2322_v38 = vpop.f32.mrb[7].mxu1 }
 0x5a0   : > { %v1391_v59 = vpop.f32.mrb[8].mxu1 }
 0x5a1   : > { %v2332_v60 = vpop.f32.mrb[9].mxu1 }
 0x5a4   : > { %v1556_v61 = vpop.f32.mrb[10].mxu1 }
 0x5a5   : > { %1561 = vrot.lane.b32.xlu1 %v1556_v61, %s2509_s21  ;;  %v2342_v62 = vpop.f32.mrb[11].mxu1 }
 0x60f   : > { %v1223_v63 = vpop.permute.xlu0 %1222 }
 0x610   : > { %v1225_v0 = vsel %vm892_vm3, %v1052_v56, %v1223_v63  ;;  %v2431_v56 = vpack.c.bf16 %v1821_v55, %v1820_v54  ;;  %v2510_v54 = vmov (!%p2234_p5), 0.0|0.0   ;;  %v2436_v55 = vpack.c.bf16 (!%p2234_p5), %v1969_v52, %v1968_v51 }
 0x611   : > { %2351 = vmatprep.mubr.msk.f32.mxu0 %vm801_vm1, %v1225_v0 }
 0x617   : > { %v1562_v1 = vpop.permute.xlu1 %1561 }
 0x618   : > { %v1564_v2 = vsel %vm892_vm3, %v1391_v59, %v1562_v1 }
 0x619   : > { %2352 = vmatmul.mubr.msk.f32.vlgmr.msra.gmra.mrb[6].mxu0 %vm801_vm1, %v1564_v2 }
 0x61a   : > { %2422 = vmatpush3.bf16.msra.mxu0 %v2419_v47 }
 0x61b   : > { %2424 = vmatprep.subr.bf16.mxu0 %v2423_v50 }
 0x61e   : > { %2426 = vmatpush3.bf16.msra.mxu0 %v2423_v50 }
 0x61f   : > { %2428 = vmatprep.subr.bf16.mxu0 %v2427_v53 }
 0x622   : > { %2430 = vmatpush3.bf16.msra.mxu0 %v2427_v53  ;;  %v1970_v53 = vld [vmem:[%s2910_s26 + $0x10] sm:$0xff] (!%p2234_p5) }
 0x623   : > { %2432 = vmatprep.subr.bf16.mxu0 %v2431_v56 }
 0x626   : > { %2434 = vmatpush3.bf16.msra.mxu0 %v2431_v56  ;;  %v1971_v56 = vld [vmem:[%s2910_s26 + $0x18] sm:$0xff] (!%p2234_p5) }
 0x627   : > { %2435 = vmatprep.subr.bf16.mxu0 (!%p2234_p5), %v2510_v54 }
 0x6ec   : > { %v2353_v4 = vpop.f32.mrb[6].mxu0 }
 0x6ed   : > { %v1654_v5 = vadd.f32 %v2353_v4, %v2221_v3  ;;  %v1648_v6 = vpop.f32.mrb[7].mxu0 }
 0x6ee   : > { %v1649_v7 = vadd.f32 %v2221_v3, %v1648_v6 }
 0x6ef   : > { %v1658_v8 = vadd.f32 %v1654_v5, %v2703_v37 }
 0x6f0   : > { %v1657_v9 = vadd.f32 %v1649_v7, %v2699_v35 }
 0x6f1   : > { %v1664_v10 = vsel %vm801_vm1, %v1658_v8, 0.0 }
 0x6f2   : > { %1665 = vadd.xlane.f32.xlu1 %v1664_v10  ;;  %v1661_v11 = vsel %vm801_vm1, %v1657_v9, 0.0 }
 0x6f3   : > { %1662 = vadd.xlane.f32.xlu0 %v1661_v11 }
 0x77f   : > { %v1666_v12 = vpop.xlane.xlu1 %1665 }
 0x780   : > { %v1669_v13 = vmul.f32 0.03125, %v1666_v12  ;;  %v1663_v14 = vpop.xlane.xlu0 %1662 }
 0x781   : > { %v1668_v15 = vmul.f32 0.03125, %v1663_v14 }
 0x782   : > { %v1671_v16 = vsub.f32 %v1658_v8, %v1669_v13 }
 0x783   : > { %v1670_v17 = vsub.f32 %v1657_v9, %v1668_v15  ;;  %v2229_v15 = vld [vmem:[%s726_s0] ss:$0 sm:$0xff] }
 0x784   : > { %v1673_v35 = vmul.f32 %v1671_v16, %v1671_v16 }
 0x785   : > { %v1672_v18 = vmul.f32 %v1670_v17, %v1670_v17 }
 0x786   : > { %v1677_v19 = vsel %vm801_vm1, %v1673_v35, 0.0 }
 0x787   : > { %v1674_v37 = vsel %vm801_vm1, %v1672_v18, 0.0 }
 0x788   : > { %1675 = vadd.xlane.f32.xlu0 %v1674_v37 }
 0x78c   : > { %1678 = vadd.xlane.f32.xlu0 %v1677_v19 }
 0x815   : > { %v1676_v26 = vpop.xlane.xlu0 %1675 }
 0x816   : > { %v1680_v27 = vmul.f32 0.03125, %v1676_v26 }
 0x818   : > { %v1682_v28 = vadd.f32 1e-12, %v1680_v27 }
 0x819   : > { %v1679_v29 = vpop.xlane.xlu0 %1678 }
 0x81a   : > { %2480 = vrsqrt.f32 %v1682_v28  ;;  %v1681_v30 = vmul.f32 0.03125, %v1679_v29 }
 0x81c   : > { %v1683_v31 = vadd.f32 1e-12, %v1681_v30 }
 0x81e   : > { %2482 = vrsqrt.f32 %v1683_v31 }
 0x824   : > { %v2481_v32 = vpop.eup %2480 }
 0x825   : > { %v1686_v34 = vmul.f32 %v2481_v32, %v1670_v17 }
 0x827   : > { %v1694_v39 = vmul.f32 %v2224_v33, %v1686_v34 }
 0x828   : > { %v2483_v40 = vpop.eup %2482 }
 0x829   : > { %v1687_v41 = vmul.f32 %v2483_v40, %v1671_v16  ;;  %v1702_v43 = vadd.f32 %v2225_v36, %v1694_v39 }
 0x82b   : > { %v1695_v44 = vmul.f32 %v2224_v33, %v1687_v41  ;;  %2362 = vmatprep.mubr.msk.f32.mxu1 %vm801_vm1, %v1702_v43 }
 0x82d   : > { %v1703_v45 = vadd.f32 %v2225_v36, %v1695_v44 }
 0x82f   : > { %2363 = vmatmul.mubr.msk.f32.vlgmr.msra.gmra.mrb[12].mxu1 %vm801_vm1, %v1703_v45 }
 0x902   : > { %v2364_v58 = vpop.f32.mrb[12].mxu1 }
 0x903   : > { %v1793_v38 = vadd.f32 %v2364_v58, %v2226_v57  ;;  %v1787_v59 = vpop.f32.mrb[13].mxu1  ;;  %v2439_v58 = vpack.c.bf16 (!%p2234_p5), %v1971_v56, %v1970_v53 }
 0x904   : > { %v1788_v60 = vadd.f32 %v2226_v57, %v1787_v59  ;;  %v2512_v57 = vmov (!%p2234_p5), 0.0  }
 0x905   : > { %v1799_v61 = vmul.f32 0.044715, %v1793_v38  ;;  %v1797_v12 = vmul.f32 0.5, %v1793_v38 }
 0x906   : > { %v1798_v62 = vmul.f32 0.044715, %v1788_v60  ;;  %v1796_v10 = vmul.f32 0.5, %v1788_v60 }
 0x907   : > { %v1801_v63 = vmul.f32 %v1799_v61, %v1793_v38 }
 0x908   : > { %v1800_v0 = vmul.f32 %v1798_v62, %v1788_v60 }
 0x909   : > { %v1803_v1 = vmul.f32 %v1801_v63, %v1793_v38 }
 0x90a   : > { %v1802_v2 = vmul.f32 %v1800_v0, %v1788_v60 }
 0x90b   : > { %v1805_v3 = vadd.f32 %v1803_v1, %v1793_v38 }
 0x90c   : > { %v1804_v4 = vadd.f32 %v1802_v2, %v1788_v60  ;;  %v2235_v60 = vld [vmem:[%s2911_s30] ss:$0 sm:$0xff] (!%p2234_p5) }
 0x90d   : > { %v1807_v5 = vmul.f32 0.7978846, %v1805_v3 }
 0x90e   : > { %v1806_v6 = vmul.f32 0.7978846, %v1804_v4 }
 0x90f   : > { %2484 = vtanh.f32 %v1807_v5 }
 0x910   : > { %2486 = vtanh.f32 %v1806_v6 }
 0x919   : > { %v2485_v7 = vpop.eup %2484 }
 0x91a   : > { %v2487_v8 = vpop.eup %2486  ;;  %v1811_v9 = vadd.f32 1.0, %v2485_v7 }
 0x91b   : > { %v1810_v11 = vadd.f32 1.0, %v2487_v8 }
 0x91c   : > { %v1813_v14 = vmul.f32 %v1811_v9, %v1797_v12 }
 0x91d   : > { %v1812_v13 = vmul.f32 %v1810_v11, %v1796_v10 }
 0x91f   : > { %2381 = vmatprep.mubr.msk.f32.mxu0 %vm1829_vm5, %v1812_v13 }
 0x920   : > { %2382 = vmatmul.mubr.msk.f32.vlgmr.msra.gmra.mrb[8].mxu0 %vm1829_vm5, %v1813_v14 }
 0x921   : > { %2392 = vmatprep.mubr.msk.f32.mxu0 (!%p2234_p5), %vm2511_vm6, %v2512_v57  ;;  %2437 = vmatpush3.bf16.msra.mxu0 (!%p2234_p5), %v2436_v55 }
 0x922   : > { %2438 = vmatprep.subr.bf16.mxu0 (!%p2234_p5), %v2510_v54 }
 0x925   : > { %2440 = vmatpush3.bf16.msra.mxu0 (!%p2234_p5), %v2439_v58 }
 0x9f3   : > { %v2383_v16 = vpop.f32.mrb[8].mxu0 }
 0x9f4   : > { %v1908_v17 = vadd.f32 %v2383_v16, %v2229_v15  ;;  %v1902_v18 = vpop.f32.mrb[9].mxu0 }
 0x9f5   : > { %v1903_v37 = vadd.f32 %v2229_v15, %v1902_v18 }
 0x9f6   : > { %v1912_v35 = vadd.f32 %v1908_v17, %v1703_v45 }
 0x9f7   : > { %v1911_v19 = vadd.f32 %v1903_v37, %v1702_v43  ;;  %v2232_v43 = vld [vmem:[%s729_s20] ss:$0 sm:$0xff] }
 0x9f8   : > { %v1918_v20 = vsel %vm801_vm1, %v1912_v35, 0.0 }
 0x9f9   : > { %1919 = vadd.xlane.f32.xlu0 %v1918_v20  ;;  %v1915_v21 = vsel %vm801_vm1, %v1911_v19, 0.0 }
 0x9fa   : > { %1916 = vadd.xlane.f32.xlu1 %v1915_v21 }
 0xa86   : > { %v1920_v22 = vpop.xlane.xlu0 %1919 }
 0xa87   : > { %v1922_v23 = vmul.f32 0.03125, %v1920_v22  ;;  %v1917_v24 = vpop.xlane.xlu1 %1916 }
 0xa88   : > { %v1921_v25 = vmul.f32 0.03125, %v1917_v24 }
 0xa89   : > { %v1924_v26 = vsub.f32 %v1912_v35, %v1922_v23 }
 0xa8a   : > { %v1923_v27 = vsub.f32 %v1911_v19, %v1921_v25 }
 0xa8b   : > { %v1926_v28 = vmul.f32 %v1924_v26, %v1924_v26 }
 0xa8c   : > { %v1925_v29 = vmul.f32 %v1923_v27, %v1923_v27 }
 0xa8d   : > { %v1930_v30 = vsel %vm801_vm1, %v1926_v28, 0.0 }
 0xa8e   : > { %1931 = vadd.xlane.f32.xlu0 %v1930_v30  ;;  %v1927_v31 = vsel %vm801_vm1, %v1925_v29, 0.0 }
 0xa8f   : > { %1928 = vadd.xlane.f32.xlu1 %v1927_v31 }
 0xb1b   : > { %v1932_v32 = vpop.xlane.xlu0 %1931 }
 0xb1c   : > { %v1934_v33 = vmul.f32 0.03125, %v1932_v32  ;;  %v1929_v34 = vpop.xlane.xlu1 %1928 }
 0xb1d   : > { %v1933_v36 = vmul.f32 0.03125, %v1929_v34 }
 0xb1e   : > { %v1936_v39 = vadd.f32 1e-12, %v1934_v33 }
 0xb1f   : > { %v1935_v40 = vadd.f32 1e-12, %v1933_v36 }
 0xb20   : > { %2488 = vrsqrt.f32 %v1936_v39 }
 0xb21   : > { %2490 = vrsqrt.f32 %v1935_v40 }
 0xb2a   : > { %v2489_v41 = vpop.eup %2488 }
 0xb2b   : > { %v2491_v44 = vpop.eup %2490  ;;  %v1940_v45 = vmul.f32 %v2489_v41, %v1924_v26 }
 0xb2c   : > { %v1939_v46 = vmul.f32 %v2491_v44, %v1923_v27  ;;  %1962 = sbr.rel (%p2234_p5) target bundleno = 3094 (0xc16), region = 100 }
 0xb2d   : > { %v1948_v47 = vmul.f32 %v2232_v43, %v1940_v45 }
 0xb2e   : > { %v1947_v48 = vmul.f32 %v2232_v43, %v1939_v46 }
 0xb2f   : > { %v1956_v49 = vadd.f32 %v2233_v42, %v1948_v47 }
 0xb30   : > { %v1955_v50 = vadd.f32 %v2233_v42, %v1947_v48 }
 0xb31   : > { %1958 = vst.msk [vmem:[#allocation2 + $0x8] sm:$0xff] %vm801_vm1, %v1956_v49  ;;  %v1964_v38 = vrot.slane (!%p2234_p5), %v1956_v49, 7 }
 0xb32   : > { %1957 = vst.msk [vmem:[#allocation2] sm:$0xff] %vm801_vm1, %v1955_v50 }
 0xb33   : > { %v1967_v59 = vsel %vm1966_vm7, %v1955_v50, %v1964_v38 }
 0xb34   : > { %2393 = vmatmul.mubr.msk.f32.vlgmr.msra.gmra.mrb[0].mxu0 %vm801_vm1, %v1967_v59 }
 0xc07   : > { %v2048_v61 = vpop.f32.mrb[0].mxu0 }
 0xc08   : > { %v2049_v62 = vadd.f32 %v2235_v60, %v2048_v61  ;;  %v2394_v63 = vpop.f32.mrb[1].mxu0 }
 0xc0a   : > { %2492 = vtanh.f32 %v2049_v62 }
 0xc14   : > { %v2493_v0 = vpop.eup %2492 }
 0xc15   : > { %2054 = vst.msk [vmem:[%s2912_s27] sm:$0x3] %vm2053_vm8, %v2493_v0 }
 0xc16 PF: > { %s2913_s0 = sld [smem:[#allocation3_spill]] }
 0xc1c   : > { %s28_s27 = sadd.s32 1, %s2913_s0  }
 0xc1d   : > { %p25_p6 = scmp.ge.s32.totalorder %s28_s27, 4  }
 0xc1f   :  { %27 = sbr.rel (!%p25_p6) target bundleno = 9 (0x9), region = 159 }

</bundles_post_ra>
